<compile_context>
chip_gen: v5e
topology: v5e:2x2
jax: 0.10.0
libtpu: 0.0.40
codegen_flags: <defaults>
</compile_context>

<pallas_src>
import numpy as np
import jax
import jax.numpy as jnp
from jax.experimental import pallas as pl
from jax.experimental.pallas import tpu as pltpu


def _affine_deform_kernel(x_ref, w_ref, o_ref):
    """out = x + x @ W for one (tn, L) tile of the packed x."""
    x = x_ref[...]
    y = jnp.dot(x, w_ref[...], preferred_element_type=jnp.float32)
    o_ref[...] = x + y.astype(x.dtype)


def _round_up(a, b):
    return ((a + b - 1) // b) * b


def affine_temporal_deformation_field(x, times, A, *, rows_per_block=4096):
    """JAX/Pallas equivalent of AffineTemporalDeformationField.forward.

    x     : (N, D) float32
    times : host int, array of identical time indices, or None
    A     : (T, D, D) float32 parameter
    """
    if times is None:
        # Mirrors the torch TypeError branch: return x unchanged.
        return x

    # Resolve the single time index as a host int.  Prefer passing a Python
    # int: that keeps the launch path free of device->host syncs.
    if isinstance(times, (int, np.integer)):
        t = int(times)
    else:
        # One-time validation glue (eager only, like torch.unique + assert).
        uq = np.unique(np.asarray(times))
        assert len(uq) == 1, "all entries of `times` must be identical"
        t = int(uq[0])

    N, D = x.shape

    # Grid-invariant prefix sum over time, computed once outside the kernel.
    a_sum = A[: t + 1].sum(axis=0)                        # (D, D)

    # ---- Lane-dense packing: P original rows per packed 128-wide row. ----
    if D < 128 and 128 % D == 0:
        P = 128 // D
    else:
        P = 1                                             # fallback: no packing
    L = P * D

    # Block-diagonal weight: each D-chunk of a packed row gets A_sum.T.
    w = jnp.kron(jnp.eye(P, dtype=a_sum.dtype), a_sum.T).astype(x.dtype)  # (L, L)

    # Packed-row count, row tile (multiple of 8 sublanes, capped so the grid
    # keeps >= 2 blocks when there is enough work — v7x has 2 TensorCores).
    n_rows = pl.cdiv(N, P)
    tn = min(rows_per_block, max(8, _round_up(pl.cdiv(n_rows, 2), 8)))
    n_rows_pad = _round_up(n_rows, tn)
    n_pad = n_rows_pad * P

    x_p = x
    if n_pad != N:
        x_p = jnp.pad(x, ((0, n_pad - N), (0, 0)))        # zero rows are harmless
    x_packed = x_p.reshape(n_rows_pad, L)

    num_blocks = n_rows_pad // tn

    out_packed = pl.pallas_call(
        _affine_deform_kernel,
        out_shape=jax.ShapeDtypeStruct((n_rows_pad, L), x.dtype),
        grid_spec=pltpu.PrefetchScalarGridSpec(
            num_scalar_prefetch=0,
            grid=(num_blocks,),
            in_specs=[
                pl.BlockSpec((tn, L), lambda i: (i, 0)),   # packed x tile
                pl.BlockSpec((L, L), lambda i: (0, 0)),    # W, VMEM-resident
            ],
            out_specs=pl.BlockSpec((tn, L), lambda i: (i, 0)),
        ),
        compiler_params=pltpu.CompilerParams(
            dimension_semantics=("parallel",),
            vmem_limit_bytes=32 * 1024 * 1024,
        ),
    )(x_packed, w)

    out = out_packed.reshape(n_pad, D)
    if n_pad != N:
        out = out[:N]
    return out


if __name__ == "__main__":
    key = jax.random.PRNGKey(0)
    k_x, k_a = jax.random.split(key)

    # Small shapes consistent with the module; N deliberately NOT a multiple
    # of the row tile to exercise the padding path.
    N, D, T = 250, 16, 4
    x = jax.random.normal(k_x, (N, D), dtype=jnp.float32)
    A = 0.05 * jax.random.normal(k_a, (T, D, D), dtype=jnp.float32)
    t = 2
    times = jnp.full((N,), t, dtype=jnp.int32)

    out = jax.block_until_ready(affine_temporal_deformation_field(x, times, A))

    # Pure-JAX reference (exact torch semantics).
    A_sum = A[: t + 1].sum(axis=0)
    ref = x + x @ A_sum.T
    np.testing.assert_allclose(np.asarray(out), np.asarray(ref),
                               rtol=1e-5, atol=1e-5)

    # Host-int time index (recommended fast path, no device->host sync).
    out2 = jax.block_until_ready(affine_temporal_deformation_field(x, t, A))
    np.testing.assert_allclose(np.asarray(out2), np.asarray(ref),
                               rtol=1e-5, atol=1e-5)

    # times=None path (torch's TypeError branch -> identity).
    out_none = jax.block_until_ready(
        affine_temporal_deformation_field(x, None, A))
    np.testing.assert_allclose(np.asarray(out_none), np.asarray(x))

    print("KERNEL_OK")
</pallas_src>

<mosaic_0001>
module attributes {stable_mosaic.version = 11 : i64} {
  func.func @_affine_deform_kernel(%arg0: i32, %arg1: memref<16x128xf32, #tpu.memory_space<vmem>>, %arg2: memref<128x128xf32, #tpu.memory_space<vmem>>, %arg3: memref<16x128xf32, #tpu.memory_space<vmem>>) attributes {dimension_semantics = [#tpu.dimension_semantics<parallel>], iteration_bounds = array<i64: 2>, scalar_prefetch = 0 : i64, scratch_operands = 0 : i64, tpu.core_type = #tpu.core_type<tc>, window_params = [{transform_indices = @transform_0, window_bounds = array<i64: 16, 128>}, {pipeline_mode = #tpu.pipeline_mode<synchronous>, transform_indices = @transform_1, window_bounds = array<i64: 128, 128>}, {transform_indices = @transform_2, window_bounds = array<i64: 16, 128>}]} {
    %c0 = arith.constant 0 : index
    %c0_0 = arith.constant 0 : index
    %0 = vector.load %arg1[%c0, %c0_0] : memref<16x128xf32, #tpu.memory_space<vmem>>, vector<16x128xf32>
    %c0_1 = arith.constant 0 : index
    %c0_2 = arith.constant 0 : index
    %1 = vector.load %arg2[%c0_1, %c0_2] : memref<128x128xf32, #tpu.memory_space<vmem>>, vector<128x128xf32>
    %cst = arith.constant dense<0.000000e+00> : vector<16x128xf32>
    %2 = tpu.matmul %0, %1, %cst {dimension_numbers = #tpu.dot_dimension_numbers<[1], [0], [0], [1], [0, 0, 1, 1], [], []>} : vector<16x128xf32>, vector<128x128xf32>, vector<16x128xf32> -> vector<16x128xf32>
    %3 = arith.addf %0, %2 : vector<16x128xf32>
    %c0_3 = arith.constant 0 : index
    %c0_4 = arith.constant 0 : index
    %4 = vector.load %arg3[%c0_3, %c0_4] : memref<16x128xf32, #tpu.memory_space<vmem>>, vector<16x128xf32>
    tpu.vector_store %arg3[%c0_3, %c0_4], %3 {strides = array<i32>} : memref<16x128xf32, #tpu.memory_space<vmem>>, vector<16x128xf32>,
    return
  }
  func.func @transform_0(%arg0: i32) -> (i32, i32) {
    %c0_i32 = arith.constant 0 : i32
    %c0_i32_0 = arith.constant 0 : i32
    return %arg0, %c0_i32 : i32, i32
  }
  func.func @transform_1(%arg0: i32) -> (i32, i32) {
    %c0_i32 = arith.constant 0 : i32
    %c0_i32_0 = arith.constant 0 : i32
    %c0_i32_1 = arith.constant 0 : i32
    return %c0_i32, %c0_i32_0 : i32, i32
  }
  func.func @transform_2(%arg0: i32) -> (i32, i32) {
    %c0_i32 = arith.constant 0 : i32
    %c0_i32_0 = arith.constant 0 : i32
    return %arg0, %c0_i32 : i32, i32
  }
}

</mosaic_0001>

<bundles_post_ra>
// kernel: tpu_custom_call.1
= control target key start
LH: loop header
LB: loop body
LE: loop exit
PB: predicated region body
PF: predicated region fallthrough
CT: control target
= control target key end

     0   :  { %7 = vsyncpa [#allocation3], 0  ;;  %s726_s0 = inlined_call_operand.hbm [shape: f32[32,128], index: 0, kind: input, shape index: {}]   ;;  %s727_s1 = inlined_call_operand.hbm [shape: f32[128,128], index: 1, kind: input, shape index: {}]   ;;  %s728_s2 = inlined_call_operand.hbm [shape: f32[32,128], index: 2, kind: output, shape index: {}]  }
   0x1   :  { %9 = vsyncpa [#allocation3 + $0x1], 0 }
   0x2   :  { %10 = vsyncpa [#allocation6], 0 }
   0x3   :  { %11 = vsyncpa [#allocation4], 0 }
   0x4   :  { %13 = vsyncpa [#allocation4 + $0x1], 0  ;;  %s574_s9 = smov 0   ;;  %s576_s10 = smov 0  }
   0x5   :  { %s578_s11 = smov 0   ;;  %s580_s12 = smov 0  }
   0x6 LB: > { %s595_s13 = sadd.s32 4294967295, %s552_s12   ;;  %s327_s14 = sadd.s32 4294967294, %s552_s12   ;;  %s552_s12 = sphi %s580_s12, %s738_s12   ;;  %s548_s11 = sphi %s578_s11, %s737_s11   ;;  %s544_s10 = sphi %s576_s10, %s736_s10   ;;  %s540_s9 = sphi %s574_s9, %s735_s9  }
   0x7   : > { %p39_p0 = scmp.ne.s32.totalorder %s544_s10, %s540_s9  ;;  %p40_p1 = scmp.eq.s32.totalorder %s595_s13, 0 }
   0x8   : > { %p84_p2 = scmp.eq.s32.totalorder %s595_s13, 1  ;;  %p90_p3 = scmp.eq.s32.totalorder %s327_s14, 1 }
   0x9   : > { %p604_p4 = por %p40_p1, %p39_p0  ;;  %p328_p5 = scmp.ge.s32.totalorder %s552_s12, 1 }
   0xa   : > { %p609_p6 = por %p90_p3, %p39_p0  ;;  %p97_p7 = scmp.lt.s32.totalorder %s552_s12, 3 }
   0xb   : > { %s108_s19 = sshll.u32 %s727_s1, 4  ;;  %s554_s21 = smov [#allocation5]   ;;  %s109_s19 = int_to_ptr.hbm [resolvable:$true] %s108_s19 }
   0xc   : > { %p617_p8 = pnand %p328_p5, %p97_p7  ;;  %s110_s22 = sshll.u32 %s554_s21, 4  ;;  %s111_s22 = int_to_ptr.vmem [resolvable:$true] %s110_s22 }
   0xd   : > { %s627_s23 = sadd.s32 1, %s552_s12   ;;  %s555_s24 = smov 128  }
   0xe   : > { %p369_p9 = pneg %p617_p8  ;;  %s556_s25 = smov 8  }
   0xf   : > { %s23_s26 = ssub.s32 %s552_s12, %s627_s23  ;;  %s26_s27 = sadd.s32 1, %s548_s11 }
  0x10   : > { %p370_p10 = pnand %p369_p9, %p40_p1  ;;  %p24_p12 = scmp.eq.s32.totalorder %s23_s26, 0 }
  0x11   : > { %p33_p13 = scmp.ne.s32.totalorder %s548_s11, %s544_s10  ;;  %p34_p0 = scmp.eq.s32.totalorder %s552_s12, 0 }
  0x12   : > { %372 = dma.hbm_to_vmem [thread:$0]  (!%p370_p10), %s109_s19, 2048, %s111_s22, [#allocation6], %s555_s24, %s555_s24, %s556_s25  }
  0x13   : > { %s639_s28 = scalar_select %p24_p12, %s548_s11, %s26_s27  }
  0x14   : > { %p643_p3 = por %p84_p2, %p33_p13  ;;  %p382_p5 = scmp.lt.s32.totalorder %s552_s12, 2 }
  0x15   : > { %s124_s30 = sand.u32 1, %s548_s11   ;;  %s343_s3 = sshll.u32 %s552_s12, 4 }
  0x16   : > { %p35_p7 = por %p34_p0, %p33_p13  ;;  %s331_s4 = sshll.u32 %s124_s30, 4 }
  0x17   : > { %s133_s7 = scalar_lea.hbm %s726_s0, %s343_s3  ;;  %s128_s14 = scalar_lea.vmem [#allocation2], %s331_s4 }
  0x18   : > { %s134_s8 = sshll.u32 %s133_s7, 4  ;;  %s136_s17 = sshll.u32 %s128_s14, 4  ;;  %s135_s8 = int_to_ptr.hbm [resolvable:$true] %s134_s8  ;;  %s137_s17 = int_to_ptr.vmem [resolvable:$true] %s136_s17 }
  0x19   : > { %p653_p9 = pnand %p382_p5, %p35_p7  ;;  %s125_s19 = scalar_lea.sflag [#allocation3], %s124_s30 }
  0x1a   : > { %s452_s21 = sshra.s32 %s135_s8, 4  ;;  %s459_s3 = scalar_lea.hbm %s726_s0, 32  ;;  %s453_s21 = int_to_ptr.hbm [resolvable:$true] %s452_s21 }
  0x1b   : > { %s454_s22 = scalar_lea.hbm %s453_s21, 16  ;;  %p456_p10 = pneg %p653_p9 }
  0x1c   : > { %p455_p2 = scmp.ne.s32.totalorder %s453_s21, %s454_s22  ;;  %p460_p0 = scmp.lt.s32.totalorder %s453_s21, %s726_s0 }
  0x1d   : > { %p461_p5 = scmp.lt.s32.totalorder %s459_s3, %s454_s22 }
  0x1e   : > { %p457_p12 = pnand %p456_p10, %p455_p2 }
  0x1f   : > { %p462_p7 = por %p461_p5, %p460_p0 }
  0x20   : > { %p458_p13 = pneg %p457_p12 }
  0x22   : > { %p463_p11 = pnand %p462_p7, %p458_p13 }
  0x24   : > { %466 = shalt.err (!%p463_p11)
}
  0x25   : > { %376 = dma.hbm_to_vmem [thread:$0]  (!%p653_p9), %s135_s8, 256, %s137_s17, %s125_s19, %s555_s24, %s555_s24, %s556_s25  }
  0x26   : > { %148 = sbr.rel (%p617_p8) target bundleno = 211 (0xd3), region = 28  ;;  %s673_s30 = sand.u32 (!%p617_p8), 1, %s544_s10  }
  0x27   : > { %s335_s6 = sshll.u32 (!%p617_p8), %s673_s30, 4  ;;  %s151_s7 = scalar_lea.sflag (!%p617_p8), [#allocation3], %s673_s30 }
  0x28   : > { %s679_s14 = scalar_lea.vmem (!%p617_p8), [#allocation2], %s335_s6 }
  0x2b   : > { %527 = dma.done.wait (%p604_p4), %s151_s7, 256  }
  0x2c   : > { %529 = vsyncadd (%p604_p4), %s151_s7, 4294967040 }
  0x2d   : > { %531 = dma.done.wait (%p40_p1), [#allocation6], 2048  }
  0x2e   : > { %533 = vsyncadd (%p40_p1), [#allocation6], 4294965248  ;;  %v200_v0 = vld [vmem:[#allocation5 + $0x78] sm:$0xff]  ;;  %v199_v1 = vld [vmem:[#allocation5 + $0x70] sm:$0xff]  ;;  %s344_s15 = sshll.u32 %s595_s13, 4  ;;  %s180_s8 = scalar_lea.vmem [#allocation7], %s335_s6 }
  0x2f   : > { %201 = vmatpush.msra.mxu0 %v200_v0  ;;  %345 = vmatpush.msra.mxu1 %v200_v0  ;;  %v198_v2 = vld [vmem:[#allocation5 + $0x68] sm:$0xff]  ;;  %v197_v3 = vld [vmem:[#allocation5 + $0x60] sm:$0xff]  ;;  %v196_v4 = vld [vmem:[#allocation5 + $0x58] sm:$0xff]  ;;  %s240_s25 = scalar_lea.hbm %s728_s2, %s344_s15  ;;  %s241_s17 = sshll.u32 %s180_s8, 4  ;;  %s242_s17 = int_to_ptr.vmem [resolvable:$true] %s241_s17 }
  0x30   : > { %v195_v5 = vld [vmem:[#allocation5 + $0x50] sm:$0xff]  ;;  %v194_v6 = vld [vmem:[#allocation5 + $0x48] sm:$0xff]  ;;  %v193_v7 = vld [vmem:[#allocation5 + $0x40] sm:$0xff]  ;;  %s243_s18 = sshll.u32 %s240_s25, 4  ;;  %s229_s19 = scalar_lea.sflag [#allocation4], %s673_s30  ;;  %s244_s18 = int_to_ptr.hbm [resolvable:$true] %s243_s18 }
  0x31   : > { %202 = vmatpush.msra.mxu0 %v199_v1  ;;  %346 = vmatpush.msra.mxu1 %v199_v1  ;;  %v192_v8 = vld [vmem:[#allocation5 + $0x38] sm:$0xff]  ;;  %v191_v9 = vld [vmem:[#allocation5 + $0x30] sm:$0xff]  ;;  %v190_v10 = vld [vmem:[#allocation5 + $0x28] sm:$0xff]  ;;  %s496_s21 = sshra.s32 %s244_s18, 4  ;;  %s502_s27 = scalar_lea.hbm %s728_s2, 32  ;;  %s497_s21 = int_to_ptr.hbm [resolvable:$true] %s496_s21 }
  0x32   : > { %v189_v11 = vld [vmem:[#allocation5 + $0x20] sm:$0xff]  ;;  %v188_v12 = vld [vmem:[#allocation5 + $0x18] sm:$0xff]  ;;  %v187_v13 = vld [vmem:[#allocation5 + $0x10] sm:$0xff]  ;;  %s498_s13 = scalar_lea.hbm %s497_s21, 16  ;;  %p503_p11 = scmp.lt.s32.totalorder %s497_s21, %s728_s2 }
  0x33   : > { %203 = vmatpush.msra.mxu0 %v198_v2  ;;  %347 = vmatpush.msra.mxu1 %v198_v2  ;;  %v186_v14 = vld [vmem:[#allocation5 + $0x8] sm:$0xff]  ;;  %v185_v15 = vld [vmem:[#allocation5] sm:$0xff]  ;;  %p499_p1 = scmp.ne.s32.totalorder %s497_s21, %s498_s13  ;;  %p504_p9 = scmp.lt.s32.totalorder %s502_s27, %s498_s13 }
  0x34   : > { %v183_v16 = vld [vmem:[%s679_s14] sm:$0xff]  ;;  %v184_v17 = vld [vmem:[%s679_s14 + $0x8] sm:$0xff] }
  0x35   : > { %204 = vmatpush.msra.mxu0 %v197_v3  ;;  %348 = vmatpush.msra.mxu1 %v197_v3  ;;  %p500_p4 = pnand %p499_p1, %p643_p3  ;;  %p505_p2 = por %p504_p9, %p503_p11 }
  0x37   : > { %205 = vmatpush.msra.mxu0 %v196_v4  ;;  %349 = vmatpush.msra.mxu1 %v196_v4  ;;  %p501_p8 = pneg %p500_p4 }
  0x39   : > { %206 = vmatpush.msra.mxu0 %v195_v5  ;;  %350 = vmatpush.msra.mxu1 %v195_v5  ;;  %p506_p10 = pnand %p505_p2, %p501_p8 }
  0x3b   : > { %207 = vmatpush.msra.mxu0 %v194_v6  ;;  %351 = vmatpush.msra.mxu1 %v194_v6 }
  0x3d   : > { %208 = vmatpush.msra.mxu0 %v193_v7  ;;  %352 = vmatpush.msra.mxu1 %v193_v7 }
  0x3f   : > { %209 = vmatpush.msra.mxu0 %v192_v8  ;;  %353 = vmatpush.msra.mxu1 %v192_v8 }
  0x41   : > { %210 = vmatpush.msra.mxu0 %v191_v9  ;;  %354 = vmatpush.msra.mxu1 %v191_v9 }
  0x43   : > { %211 = vmatpush.msra.mxu0 %v190_v10  ;;  %355 = vmatpush.msra.mxu1 %v190_v10 }
  0x45   : > { %212 = vmatpush.msra.mxu0 %v189_v11  ;;  %356 = vmatpush.msra.mxu1 %v189_v11 }
  0x47   : > { %213 = vmatpush.msra.mxu0 %v188_v12  ;;  %357 = vmatpush.msra.mxu1 %v188_v12 }
  0x49   : > { %214 = vmatpush.msra.mxu0 %v187_v13  ;;  %358 = vmatpush.msra.mxu1 %v187_v13 }
  0x4b   : > { %215 = vmatpush.msra.mxu0 %v186_v14  ;;  %359 = vmatpush.msra.mxu1 %v186_v14 }
  0x4d   : > { %216 = vmatpush.msra.mxu0 %v185_v15  ;;  %360 = vmatpush.msra.mxu1 %v185_v15 }
  0x4e   : > { %217 = vmatmul.f32.vlgmr.msra.gmra.mxu0 %v183_v16  ;;  %220 = vmatmul.f32.vlgmr.msra.gmra.mxu1 %v184_v17 }
  0xcb   : > { %v218_v18 = vpop.f32.mrf.mxu0  ;;  %v221_v19 = vpop.f32.mrf.mxu1 }
  0xcc   : > { %v224_v20 = vadd.f32 %v218_v18, %v183_v16  ;;  %v225_v21 = vadd.f32 %v221_v19, %v184_v17 }
  0xce   : > { %226 = vst [vmem:[%s180_s8] sm:$0xff] %v224_v20 }
  0xcf   : > { %227 = vst [vmem:[%s180_s8 + $0x8] sm:$0xff] %v225_v21 }
  0xd0   : > { %509 = shalt.err (!%p506_p10)
}
  0xd1   : > { %s557_s5 = smov 128   ;;  %s558_s30 = smov 8  }
  0xd2   : > { %367 = dma.vmem_to_hbm [thread:$0]  (%p643_p3), %s242_s17, 256, %s244_s18, %s229_s19, %s557_s5, %s557_s5, %s558_s30  }
  0xd3 PF: > { %s258_s6 = sand.u32 1, %s540_s9   ;;  %p734_p12 = scmp.ge.s32.totalorder %s552_s12, 2 }
  0xd4   : > { %s259_s7 = scalar_lea.sflag [#allocation4], %s258_s6 }
  0xd5   : > { %p378_p13 = pnand %p734_p12, %p609_p6 }
  0xd7   : > { %p379_p0 = pneg %p378_p13 }
  0xd9   : > { %535 = dma.done.wait (%p379_p0), %s259_s7, 256  }
  0xda   : > { %537 = vsyncadd (%p379_p0), %s259_s7, 4294967040  ;;  %p16_p5 = scmp.ge.s32.totalorder %s627_s23, 4   ;;  %s735_s9 = smov %s544_s10 }
  0xdb   : > { %s736_s10 = smov %s548_s11  ;;  %s737_s11 = smov %s639_s28 }
  0xdc   : > { %s738_s12 = smov %s627_s23  ;;  %18 = sbr.rel (!%p16_p5) target bundleno = 6 (0x6), region = 77 }
  0xe1   :  { %265 = vsyncpa [#allocation3], 1 }
  0xe2   :  { %267 = vsyncpa [#allocation3 + $0x1], 1 }
  0xe3   :  { %268 = vsyncpa [#allocation6], 1 }
  0xe4   :  { %269 = vsyncpa [#allocation4], 1 }
  0xe5   :  { %271 = vsyncpa [#allocation4 + $0x1], 1 }

</bundles_post_ra>
